<compile_context>
chip_gen: v7x
topology: tpu7x:2x2x1
jax: 0.10.0
libtpu: 0.0.40
codegen_flags: <defaults>
</compile_context>

<pallas_src>
import functools

import jax
import jax.numpy as jnp
from jax.experimental import pallas as pl
from jax.experimental.pallas import tpu as pltpu

LEAKY_ALPHA = 0.2
NEG_INF = -1e9


# ---------------------------------------------------------------------------
# Kernel 1: head-fused node projection — runs ONCE (hoisted out of row tiling).
#   proj = x @ [W_0 .. W_{H-1} | W a_src | W a_dst]  ->  (N, H*D + 2H)
# ---------------------------------------------------------------------------
def _proj_kernel(x_ref, w_ref, o_ref):
    o_ref[...] = jnp.dot(x_ref[...], w_ref[...],
                         preferred_element_type=jnp.float32)


# ---------------------------------------------------------------------------
# Kernel 2: per-row-tile masked softmax + aggregation, all heads fused.
# ---------------------------------------------------------------------------
def _gat_agg_kernel(adj_ref, esrc_ref, edst_ref, hblk_ref, o_ref, *, heads):
    # Additive edge-mask bias: built once per tile, shared across heads.
    bias = jnp.where(adj_ref[...] != 0, 0.0, NEG_INF)       # (Tq, N) f32
    e_src = esrc_ref[...]                                    # (Tq, H) query-side logits
    e_dst = edst_ref[...]                                    # (H, N)  neighbor-side logits

    ps = []
    for h in range(heads):                                   # short, unrolled (H small)
        e = e_src[:, h:h + 1] + e_dst[h:h + 1, :]            # (Tq, N)
        e = jnp.maximum(e, LEAKY_ALPHA * e) + bias           # LeakyReLU(0.2) fused w/ mask
        m = jnp.max(e, axis=-1, keepdims=True)               # (Tq, 1)
        p = jnp.exp(e - m)                                   # masked -> underflow to 0
        denom = jnp.sum(p, axis=-1, keepdims=True)           # >= 1 given self-loops
        p = p * pl.reciprocal(denom, approx=False)           # exact recip (ref parity)
        ps.append(p.astype(jnp.bfloat16))                    # bf16 MXU operand

    # Lane-aligned concat of 128-wide prob slabs, then ONE MXU matmul against the
    # block-diagonal neighbor features -> already-concatenated (Tq, H*D) output.
    p_cat = jnp.concatenate(ps, axis=-1)                     # (Tq, H*N) bf16
    o_ref[...] = jnp.dot(p_cat, hblk_ref[...],
                         preferred_element_type=jnp.float32).astype(o_ref.dtype)


def _default_row_tiles(n):
    # v7x has 2 TensorCores -> give each core a row tile; v5e/v6e are single-TC,
    # so one big tile avoids per-step overhead and re-touching shared inputs.
    try:
        kind = jax.devices()[0].device_kind.lower()
    except Exception:
        kind = ""
    if "v7" in kind and n % 16 == 0:
        return 2
    return 1


def graph_att_conv(x, adj, w, a_src, a_dst, *, row_tiles=None):
    """Multi-head GAT forward.

    x     : (N, F_in) f32
    adj   : (N, N) 0/1 mask (every row must have >=1 nonzero, e.g. self-loops)
    w     : (H, F_in, D);  a_src, a_dst : (H, D)
    returns (N, H*D), head h in cols [h*D:(h+1)*D]  (torch.cat order)
    """
    N, F_in = x.shape
    H, _, D = w.shape
    HD = H * D

    if row_tiles is None:
        row_tiles = _default_row_tiles(N)
    assert N % row_tiles == 0
    tq = N // row_tiles
    assert tq % 8 == 0, "row tile must be sublane-aligned"

    # ---- head-fused weights (tiny, computed once) ----
    #   W_all[:, h*D:(h+1)*D] = W_h ;  A_src[:, h] = W_h a_src_h ;  A_dst[:, h] = W_h a_dst_h
    w_all = jnp.transpose(w, (1, 0, 2)).reshape(F_in, HD)            # (F_in, H*D)
    a_src_proj = jnp.einsum("hfd,hd->fh", w, a_src)                  # (F_in, H)
    a_dst_proj = jnp.einsum("hfd,hd->fh", w, a_dst)                  # (F_in, H)
    w_fused = jnp.concatenate([w_all, a_src_proj, a_dst_proj], 1)    # (F_in, H*D + 2H)

    # ---- hoisted projection: ONE kernel call, not per row tile ----
    proj = pl.pallas_call(
        _proj_kernel,
        out_shape=jax.ShapeDtypeStruct((N, HD + 2 * H), jnp.float32),
    )(x, w_fused)

    h_all = proj[:, :HD]                                             # (N, H*D)
    e_src = proj[:, HD:HD + H]                                       # (N, H)   a_src . h_i
    e_dst_t = jnp.transpose(proj[:, HD + H:])                        # (H, N)   a_dst . h_j

    # Block-diagonal neighbor features: h_blk[h*N+n, g*D+d] = (x@W_h)[n,d] * (h==g).
    # Lets the per-tile aggregation be a single matmul with lane-contiguous output.
    h_heads = jnp.transpose(h_all.reshape(N, H, D), (1, 0, 2))       # (H, N, D)
    eye_h = jnp.eye(H, dtype=h_all.dtype)
    h_blk = (h_heads[:, :, None, :] * eye_h[:, None, :, None]).reshape(H * N, HD)
    h_blk = h_blk.astype(jnp.bfloat16)                               # bf16 MXU operand

    adj_i8 = (adj != 0).astype(jnp.int8)                             # 4x less DMA/VMEM

    kernel = functools.partial(_gat_agg_kernel, heads=H)
    return pl.pallas_call(
        kernel,
        out_shape=jax.ShapeDtypeStruct((N, HD), jnp.float32),
        grid_spec=pltpu.PrefetchScalarGridSpec(
            num_scalar_prefetch=0,
            grid=(row_tiles,),
            in_specs=[
                pl.BlockSpec((tq, N), lambda i: (i, 0)),             # adj row tile (int8)
                pl.BlockSpec((tq, H), lambda i: (i, 0)),             # query-side logits
                pl.BlockSpec((H, N), lambda i: (0, 0)),              # neighbor-side logits
                pl.BlockSpec((H * N, HD), lambda i: (0, 0)),         # block-diag h (bf16)
            ],
            out_specs=pl.BlockSpec((tq, HD), lambda i: (i, 0)),
        ),
        compiler_params=pltpu.CompilerParams(
            dimension_semantics=("parallel",)),
    )(adj_i8, e_src, e_dst_t, h_blk)


# ---------------------------------------------------------------------------
# Pure-JAX reference (eval-mode GraphAttConv) for correctness checking.
# ---------------------------------------------------------------------------
def gat_reference(x, adj, w, a_src, a_dst):
    outs = []
    for h in range(w.shape[0]):
        hfeat = x @ w[h]                                             # (N, D)
        s = hfeat @ a_src[h]                                         # (N,)
        t = hfeat @ a_dst[h]                                         # (N,)
        e = s[:, None] + t[None, :]                                  # (N, N)
        e = jnp.where(e > 0, e, LEAKY_ALPHA * e)
        e = jnp.where(adj > 0, e, -jnp.inf)
        alpha = jax.nn.softmax(e, axis=-1)
        outs.append(alpha @ hfeat)
    return jnp.concatenate(outs, axis=-1)


def init_params(key, in_features, out_features, heads):
    assert out_features % heads == 0
    D = out_features // heads
    k_w, k_a = jax.random.split(key)
    gain = jnp.sqrt(2.0)  # nn.init.calculate_gain('relu')
    std_w = gain * jnp.sqrt(2.0 / (in_features + D))
    std_a = gain * jnp.sqrt(2.0 / (1 + 2 * D))
    w = std_w * jax.random.normal(k_w, (heads, in_features, D), jnp.float32)
    a = std_a * jax.random.normal(k_a, (heads, 2 * D), jnp.float32)
    return w, a[:, :D], a[:, D:]


if __name__ == "__main__":
    key = jax.random.PRNGKey(0)
    k_x, k_adj, k_p = jax.random.split(key, 3)

    N = 128
    in_features = 32
    out_features = 32
    heads = 4            # -> D = 8 per head

    x = jax.random.normal(k_x, (N, in_features), jnp.float32)
    # Random sparse-ish adjacency with self loops so every row has >=1 neighbor.
    adj = (jax.random.uniform(k_adj, (N, N)) < 0.25).astype(jnp.float32)
    adj = jnp.maximum(adj, jnp.eye(N, dtype=jnp.float32))

    w, a_src, a_dst = init_params(k_p, in_features, out_features, heads)

    out = graph_att_conv(x, adj, w, a_src, a_dst)
    jax.block_until_ready(out)
    assert out.shape == (N, out_features), out.shape

    ref = gat_reference(x, adj, w, a_src, a_dst)
    err = float(jnp.max(jnp.abs(out - ref)))
    assert err < 0.1, f"max abs err vs reference: {err}"

    print("KERNEL_OK")
</pallas_src>

<mosaic_0001>
module attributes {stable_mosaic.version = 11 : i64} {
  func.func @_proj_kernel(%arg0: memref<128x32xf32, #tpu.memory_space<vmem>>, %arg1: memref<32x40xf32, #tpu.memory_space<vmem>>, %arg2: memref<128x40xf32, #tpu.memory_space<vmem>>) attributes {dimension_semantics = [], scalar_prefetch = 0 : i64, scratch_operands = 0 : i64, tpu.core_type = #tpu.core_type<tc>} {
    %c0 = arith.constant 0 : index
    %c0_0 = arith.constant 0 : index
    %0 = vector.load %arg0[%c0, %c0_0] : memref<128x32xf32, #tpu.memory_space<vmem>>, vector<128x32xf32>
    %c0_1 = arith.constant 0 : index
    %c0_2 = arith.constant 0 : index
    %1 = vector.load %arg1[%c0_1, %c0_2] : memref<32x40xf32, #tpu.memory_space<vmem>>, vector<32x40xf32>
    %cst = arith.constant dense<0.000000e+00> : vector<128x40xf32>
    %2 = tpu.matmul %0, %1, %cst {dimension_numbers = #tpu.dot_dimension_numbers<[1], [0], [0], [1], [0, 0, 1, 1], [], []>} : vector<128x32xf32>, vector<32x40xf32>, vector<128x40xf32> -> vector<128x40xf32>
    %c0_3 = arith.constant 0 : index
    %c0_4 = arith.constant 0 : index
    %3 = vector.load %arg2[%c0_3, %c0_4] : memref<128x40xf32, #tpu.memory_space<vmem>>, vector<128x40xf32>
    tpu.vector_store %arg2[%c0_3, %c0_4], %2 {strides = array<i32>} : memref<128x40xf32, #tpu.memory_space<vmem>>, vector<128x40xf32>,
    return
  }
}

</mosaic_0001>

<bundles_post_ra>
// kernel: tpu_custom_call.1
= control target key start
LH: loop header
LB: loop body
LE: loop exit
PB: predicated region body
PF: predicated region fallthrough
CT: control target
= control target key end

     0   :  { %vm31_vm0 = vcmask 261120   ;;  %vm225_vm1 = vcmask 326656   ;;  %s481_s1 = inlined_call_operand.vmem [shape: f32[32,40], index: 1, kind: input, shape index: {}]   ;;  %s482_s0 = inlined_call_operand.vmem [shape: f32[128,32], index: 0, kind: input, shape index: {}]   ;;  %s483_s2 = inlined_call_operand.vmem [shape: f32[128,40], index: 2, kind: output, shape index: {}]  }
   0x1   :  { %v27_v0 = vld [vmem:[%s481_s1] sm:$0xff]  ;;  %v28_v1 = vld [vmem:[%s481_s1 + $0x8] sm:$0xff]  ;;  %v29_v2 = vld [vmem:[%s481_s1 + $0x10] sm:$0xff] }
   0x2   :  { %v314_v3 = vpack.c.bf16 %v28_v1, %v27_v0  ;;  %v30_v4 = vld [vmem:[%s481_s1 + $0x18] sm:$0xff]  ;;  %v11_v5 = vld [vmem:[%s482_s0] sm:$0xff]  ;;  %v12_v8 = vld [vmem:[%s482_s0 + $0x8] sm:$0xff] }
   0x3   :  { %v19_v6 = vld [vmem:[%s482_s0 + $0x40] sm:$0xff]  ;;  %v318_v7 = vpack.c.bf16 %v30_v4, %v29_v2  ;;  %290 = vmatprep.mubr.msk.f32.mxu0 %vm31_vm0, %v11_v5  ;;  %v20_v9 = vld [vmem:[%s482_s0 + $0x48] sm:$0xff]  ;;  %v13_v10 = vld [vmem:[%s482_s0 + $0x10] sm:$0xff] }
   0x4   :  { %302 = vmatprep.mubr.msk.f32.mxu1 %vm31_vm0, %v19_v6  ;;  %315 = vmatprep.subr.bf16.mxu0 %v314_v3  ;;  %v21_v11 = vld [vmem:[%s482_s0 + $0x50] sm:$0xff]  ;;  %v14_v12 = vld [vmem:[%s482_s0 + $0x18] sm:$0xff]  ;;  %v15_v14 = vld [vmem:[%s482_s0 + $0x20] sm:$0xff] }
   0x5   :  { %322 = vmatprep.subr.bf16.mxu1 %v314_v3  ;;  %317 = vmatpush3.bf16.msra.mxu0 %v314_v3  ;;  %v22_v13 = vld [vmem:[%s482_s0 + $0x58] sm:$0xff]  ;;  %v23_v15 = vld [vmem:[%s482_s0 + $0x60] sm:$0xff]  ;;  %v16_v16 = vld [vmem:[%s482_s0 + $0x28] sm:$0xff] }
   0x6   :  { %324 = vmatpush3.bf16.msra.mxu1 %v314_v3  ;;  %319 = vmatprep.subr.bf16.mxu0 %v318_v7  ;;  %v24_v17 = vld [vmem:[%s482_s0 + $0x68] sm:$0xff]  ;;  %v17_v18 = vld [vmem:[%s482_s0 + $0x30] sm:$0xff]  ;;  %v18_v20 = vld [vmem:[%s482_s0 + $0x38] sm:$0xff] }
   0x7   :  { %323 = vmatprep.subr.bf16.mxu1 %v318_v7  ;;  %v25_v19 = vld [vmem:[%s482_s0 + $0x70] sm:$0xff]  ;;  %v26_v21 = vld [vmem:[%s482_s0 + $0x78] sm:$0xff] }
   0x9   :  { %321 = vmatpush3.bf16.msra.mxu0 %v318_v7 }
   0xa   :  { %325 = vmatpush3.bf16.msra.mxu1 %v318_v7 }
   0xc   :  { %291 = vmatmul.mubr.msk.f32.vlgmr.msra.gmra.mrb[0].mxu0 %vm31_vm0, %v12_v8 }
   0xd   :  { %303 = vmatmul.mubr.msk.f32.vlgmr.msra.gmra.mrb[0].mxu1 %vm31_vm0, %v20_v9  ;;  %293 = vmatprep.mubr.msk.f32.mxu0 %vm31_vm0, %v13_v10 }
   0xe   :  { %305 = vmatprep.mubr.msk.f32.mxu1 %vm31_vm0, %v21_v11 }
  0x10   :  { %294 = vmatmul.mubr.msk.f32.gmra.mrb[2].mxu0 %vm31_vm0, %v14_v12 }
  0x11   :  { %306 = vmatmul.mubr.msk.f32.gmra.mrb[2].mxu1 %vm31_vm0, %v22_v13  ;;  %296 = vmatprep.mubr.msk.f32.mxu0 %vm31_vm0, %v15_v14 }
  0x12   :  { %308 = vmatprep.mubr.msk.f32.mxu1 %vm31_vm0, %v23_v15 }
  0x14   :  { %297 = vmatmul.mubr.msk.f32.gmra.mrb[4].mxu0 %vm31_vm0, %v16_v16 }
  0x15   :  { %309 = vmatmul.mubr.msk.f32.gmra.mrb[4].mxu1 %vm31_vm0, %v24_v17  ;;  %299 = vmatprep.mubr.msk.f32.mxu0 %vm31_vm0, %v17_v18 }
  0x16   :  { %311 = vmatprep.mubr.msk.f32.mxu1 %vm31_vm0, %v25_v19 }
  0x18   :  { %300 = vmatmul.mubr.msk.f32.gmra.mrb[6].mxu0 %vm31_vm0, %v18_v20 }
  0x19   :  { %312 = vmatmul.mubr.msk.f32.gmra.mrb[6].mxu1 %vm31_vm0, %v26_v21 }
  0xdf   :  { %v292_v22 = vpop.f32.mrb[0].mxu0 }
  0xe0   :  { %v304_v23 = vpop.f32.mrb[0].mxu1  ;;  %227 = vst.msk [vmem:[%s483_s2 + $0x8] sm:$0xff] %vm225_vm1, %v292_v22  ;;  %v146_v24 = vpop.f32.mrb[1].mxu0 }
  0xe1   :  { %235 = vst.msk [vmem:[%s483_s2 + $0x48] sm:$0xff] %vm225_vm1, %v304_v23  ;;  %v186_v25 = vpop.f32.mrb[1].mxu1  ;;  %226 = vst.msk [vmem:[%s483_s2] sm:$0xff] %vm225_vm1, %v146_v24 }
  0xe2   :  { %234 = vst.msk [vmem:[%s483_s2 + $0x40] sm:$0xff] %vm225_vm1, %v186_v25 }
  0xe3   :  { %v295_v26 = vpop.f32.mrb[2].mxu0 }
  0xe4   :  { %v307_v27 = vpop.f32.mrb[2].mxu1  ;;  %229 = vst.msk [vmem:[%s483_s2 + $0x18] sm:$0xff] %vm225_vm1, %v295_v26  ;;  %v156_v28 = vpop.f32.mrb[3].mxu0 }
  0xe5   :  { %237 = vst.msk [vmem:[%s483_s2 + $0x58] sm:$0xff] %vm225_vm1, %v307_v27  ;;  %v196_v29 = vpop.f32.mrb[3].mxu1  ;;  %228 = vst.msk [vmem:[%s483_s2 + $0x10] sm:$0xff] %vm225_vm1, %v156_v28 }
  0xe6   :  { %236 = vst.msk [vmem:[%s483_s2 + $0x50] sm:$0xff] %vm225_vm1, %v196_v29 }
  0xe7   :  { %v298_v30 = vpop.f32.mrb[4].mxu0 }
  0xe8   :  { %v310_v31 = vpop.f32.mrb[4].mxu1  ;;  %231 = vst.msk [vmem:[%s483_s2 + $0x28] sm:$0xff] %vm225_vm1, %v298_v30  ;;  %v166_v32 = vpop.f32.mrb[5].mxu0 }
  0xe9   :  { %239 = vst.msk [vmem:[%s483_s2 + $0x68] sm:$0xff] %vm225_vm1, %v310_v31  ;;  %v206_v33 = vpop.f32.mrb[5].mxu1  ;;  %230 = vst.msk [vmem:[%s483_s2 + $0x20] sm:$0xff] %vm225_vm1, %v166_v32 }
  0xea   :  { %238 = vst.msk [vmem:[%s483_s2 + $0x60] sm:$0xff] %vm225_vm1, %v206_v33 }
  0xeb   :  { %v301_v34 = vpop.f32.mrb[6].mxu0 }
  0xec   :  { %v313_v35 = vpop.f32.mrb[6].mxu1  ;;  %233 = vst.msk [vmem:[%s483_s2 + $0x38] sm:$0xff] %vm225_vm1, %v301_v34  ;;  %v176_v36 = vpop.f32.mrb[7].mxu0 }
  0xed   :  { %241 = vst.msk [vmem:[%s483_s2 + $0x78] sm:$0xff] %vm225_vm1, %v313_v35  ;;  %v216_v37 = vpop.f32.mrb[7].mxu1  ;;  %232 = vst.msk [vmem:[%s483_s2 + $0x30] sm:$0xff] %vm225_vm1, %v176_v36 }
  0xee   :  { %240 = vst.msk [vmem:[%s483_s2 + $0x70] sm:$0xff] %vm225_vm1, %v216_v37 }

</bundles_post_ra>
